<compile_context>
chip_gen: v6e
topology: v6e:2x2x1
jax: 0.10.0
libtpu: 0.0.40
codegen_flags: <defaults>
</compile_context>

<pallas_src>
import jax
import jax.numpy as jnp
from jax.experimental import pallas as pl
from jax.experimental.pallas import tpu as pltpu


def _round_up(x, m):
    return ((x + m - 1) // m) * m


def _pick_tile(padded_dim, candidates):
    for c in candidates:
        if padded_dim % c == 0:
            return c
    return padded_dim


def _gcn_kernel(adj_ref, x_ref, wt_ref, b_ref, out_ref, acc_ref):
    """grid = (row_tiles, k_tiles); reduction axis (k) is last."""
    k = pl.program_id(1)

    @pl.when(k == 0)
    def _():
        acc_ref[...] = jnp.zeros_like(acc_ref)

    # Partial aggregation: adj_tile (TN, TK) bf16 @ x_tile (TK, F_in) bf16 -> f32.
    acc_ref[...] += jnp.dot(
        adj_ref[...], x_ref[...], preferred_element_type=jnp.float32)

    @pl.when(k == pl.num_programs(1) - 1)
    def _():
        # Linear: (TN, F_in) @ W^T (F_in, F_out) -> (TN, F_out), f32 accumulate.
        agg = acc_ref[...].astype(wt_ref.dtype)
        lin = jnp.dot(agg, wt_ref[...], preferred_element_type=jnp.float32)
        lin = lin + b_ref[...]                      # (1, F_out) f32 broadcast
        out_ref[...] = jnp.maximum(lin, 0.0).astype(out_ref.dtype)


def gcn_layer(x, adj, weight, bias, *, compute_dtype=jnp.bfloat16):
    """relu((adj @ x) @ weight.T + bias) via a tiled Pallas kernel.

    x: (N, F_in) f32, adj: (N, N) f32, weight: (F_out, F_in) f32, bias: (F_out,) f32.
    """
    n, f_in = x.shape
    f_out = weight.shape[0]

    # ---- pad to lane-dense, (8,128)-aligned shapes ----
    n_pad = _round_up(n, 128)          # N is both a sublane dim and a lane/K dim
    f_in_pad = _round_up(f_in, 128)
    f_out_pad = _round_up(f_out, 128)

    tile_n = _pick_tile(n_pad, (256, 128))        # output-row tile
    tile_k = _pick_tile(n_pad, (512, 256, 128))   # adj-column reduction tile

    adj_p = jnp.zeros((n_pad, n_pad), compute_dtype)
    adj_p = adj_p.at[:n, :n].set(adj.astype(compute_dtype))
    x_p = jnp.zeros((n_pad, f_in_pad), compute_dtype)
    x_p = x_p.at[:n, :f_in].set(x.astype(compute_dtype))
    # Weight transpose hoisted here (cheap XLA op), kernel sees (F_in, F_out).
    wt_p = jnp.zeros((f_in_pad, f_out_pad), compute_dtype)
    wt_p = wt_p.at[:f_in, :f_out].set(weight.T.astype(compute_dtype))
    b_p = jnp.zeros((1, f_out_pad), jnp.float32)
    b_p = b_p.at[0, :f_out].set(bias.astype(jnp.float32))

    grid = (n_pad // tile_n, n_pad // tile_k)

    itemsize = jnp.dtype(compute_dtype).itemsize
    cost = pl.CostEstimate(
        flops=int(2 * n * n * f_in + 2 * n * f_in * f_out),
        transcendentals=0,
        bytes_accessed=int(
            adj_p.size * itemsize + x_p.size * itemsize
            + wt_p.size * itemsize + b_p.size * 4 + n_pad * f_out_pad * 4),
    )

    out_p = pl.pallas_call(
        _gcn_kernel,
        out_shape=jax.ShapeDtypeStruct((n_pad, f_out_pad), jnp.float32),
        grid_spec=pltpu.PrefetchScalarGridSpec(
            num_scalar_prefetch=0,
            grid=grid,
            in_specs=[
                pl.BlockSpec((tile_n, tile_k), lambda i, k: (i, k)),      # adj
                pl.BlockSpec((tile_k, f_in_pad), lambda i, k: (k, 0)),    # x
                pl.BlockSpec((f_in_pad, f_out_pad), lambda i, k: (0, 0)),  # W^T (resident)
                pl.BlockSpec((1, f_out_pad), lambda i, k: (0, 0)),        # bias (resident)
            ],
            out_specs=pl.BlockSpec((tile_n, f_out_pad), lambda i, k: (i, 0)),
            scratch_shapes=[pltpu.VMEM((tile_n, f_in_pad), jnp.float32)],
        ),
        compiler_params=pltpu.CompilerParams(
            dimension_semantics=("parallel", "arbitrary"),
        ),
        cost_estimate=cost,
    )(adj_p, x_p, wt_p, b_p)

    # Slice padding back off.
    return out_p[:n, :f_out]


if __name__ == "__main__":
    num_cells = 36
    in_features = 16
    out_features = 32

    key = jax.random.PRNGKey(0)
    kx, kw, kb = jax.random.split(key, 3)

    # Inputs: node features and identity adjacency (as in the reference script).
    x = jax.random.normal(kx, (num_cells, in_features), dtype=jnp.float32)
    adj = jnp.eye(num_cells, dtype=jnp.float32)

    # Deterministic nn.Linear-style init: U(-1/sqrt(F_in), 1/sqrt(F_in)).
    bound = 1.0 / (in_features ** 0.5)
    weight = jax.random.uniform(
        kw, (out_features, in_features), minval=-bound, maxval=bound,
        dtype=jnp.float32)
    bias = jax.random.uniform(
        kb, (out_features,), minval=-bound, maxval=bound, dtype=jnp.float32)

    out = gcn_layer(x, adj, weight, bias)
    out = jax.block_until_ready(out)
    assert out.shape == (num_cells, out_features)

    # Precision-matched reference (same bf16 inputs, f32 accumulation).
    adj_b = adj.astype(jnp.bfloat16)
    x_b = x.astype(jnp.bfloat16)
    wt_b = weight.T.astype(jnp.bfloat16)
    agg = jnp.dot(adj_b, x_b, preferred_element_type=jnp.float32)
    ref_matched = jnp.maximum(
        jnp.dot(agg.astype(jnp.bfloat16), wt_b,
                preferred_element_type=jnp.float32) + bias, 0.0)
    assert jnp.allclose(out, ref_matched, atol=1e-3, rtol=1e-3)

    # Loose check against the pure-f32 PyTorch-semantics reference
    # (bf16 operand rounding is the only difference).
    ref_f32 = jnp.maximum(jnp.dot(jnp.dot(adj, x), weight.T) + bias, 0.0)
    assert jnp.allclose(out, ref_f32, atol=3e-2, rtol=3e-2)

    print("KERNEL_OK")
</pallas_src>

<mosaic_0001>
module attributes {stable_mosaic.version = 11 : i64} {
  func.func @_gcn_kernel(%arg0: i32, %arg1: i32, %arg2: memref<128x128xbf16, #tpu.memory_space<vmem>>, %arg3: memref<128x128xbf16, #tpu.memory_space<vmem>>, %arg4: memref<128x128xbf16, #tpu.memory_space<vmem>>, %arg5: memref<1x128xf32, #tpu.memory_space<vmem>>, %arg6: memref<128x128xf32, #tpu.memory_space<vmem>>, %arg7: memref<128x128xf32, #tpu.memory_space<vmem>>) attributes {dimension_semantics = [#tpu.dimension_semantics<parallel>, #tpu.dimension_semantics<arbitrary>], iteration_bounds = array<i64: 1, 1>, scalar_prefetch = 0 : i64, scratch_operands = 1 : i64, tpu.core_type = #tpu.core_type<tc>, window_params = [{transform_indices = @transform_0, window_bounds = array<i64: 128, 128>}, {transform_indices = @transform_1, window_bounds = array<i64: 128, 128>}, {pipeline_mode = #tpu.pipeline_mode<synchronous>, transform_indices = @transform_2, window_bounds = array<i64: 128, 128>}, {pipeline_mode = #tpu.pipeline_mode<synchronous>, transform_indices = @transform_3, window_bounds = array<i64: 1, 128>}, {transform_indices = @transform_4, window_bounds = array<i64: 128, 128>}]} {
    %c0_i32 = arith.constant 0 : i32
    %0 = arith.cmpi eq, %arg1, %c0_i32 : i32
    %1 = arith.extui %0 : i1 to i32
    %c0_i32_0 = arith.constant 0 : i32
    %2 = arith.cmpi ne, %1, %c0_i32_0 : i32
    scf.if %2 {
      %cst_10 = arith.constant 0.000000e+00 : f32
      %12 = vector.broadcast %cst_10 : f32 to vector<128x128xf32>
      %c0_11 = arith.constant 0 : index
      %c0_12 = arith.constant 0 : index
      %13 = vector.load %arg7[%c0_11, %c0_12] : memref<128x128xf32, #tpu.memory_space<vmem>>, vector<128x128xf32>
      tpu.vector_store %arg7[%c0_11, %c0_12], %12 {strides = array<i32>} : memref<128x128xf32, #tpu.memory_space<vmem>>, vector<128x128xf32>,
    } else {
    }
    %c0 = arith.constant 0 : index
    %c0_1 = arith.constant 0 : index
    %3 = vector.load %arg7[%c0, %c0_1] : memref<128x128xf32, #tpu.memory_space<vmem>>, vector<128x128xf32>
    %c0_2 = arith.constant 0 : index
    %c0_3 = arith.constant 0 : index
    %4 = vector.load %arg2[%c0_2, %c0_3] : memref<128x128xbf16, #tpu.memory_space<vmem>>, vector<128x128xbf16>
    %c0_4 = arith.constant 0 : index
    %c0_5 = arith.constant 0 : index
    %5 = vector.load %arg3[%c0_4, %c0_5] : memref<128x128xbf16, #tpu.memory_space<vmem>>, vector<128x128xbf16>
    %cst = arith.constant dense<0.000000e+00> : vector<128x128xf32>
    %6 = tpu.matmul %4, %5, %cst {dimension_numbers = #tpu.dot_dimension_numbers<[1], [0], [0], [1], [0, 0, 1, 1], [], []>} : vector<128x128xbf16>, vector<128x128xbf16>, vector<128x128xf32> -> vector<128x128xf32>
    %7 = arith.addf %3, %6 : vector<128x128xf32>
    %c0_6 = arith.constant 0 : index
    %c0_7 = arith.constant 0 : index
    %8 = vector.load %arg7[%c0_6, %c0_7] : memref<128x128xf32, #tpu.memory_space<vmem>>, vector<128x128xf32>
    tpu.vector_store %arg7[%c0_6, %c0_7], %7 {strides = array<i32>} : memref<128x128xf32, #tpu.memory_space<vmem>>, vector<128x128xf32>,
    %c0_i32_8 = arith.constant 0 : i32
    %9 = arith.cmpi eq, %arg1, %c0_i32_8 : i32
    %10 = arith.extui %9 : i1 to i32
    %c0_i32_9 = arith.constant 0 : i32
    %11 = arith.cmpi ne, %10, %c0_i32_9 : i32
    scf.if %11 {
      %c0_10 = arith.constant 0 : index
      %c0_11 = arith.constant 0 : index
      %12 = vector.load %arg7[%c0_10, %c0_11] : memref<128x128xf32, #tpu.memory_space<vmem>>, vector<128x128xf32>
      %13 = arith.truncf %12 : vector<128x128xf32> to vector<128x128xbf16>
      %c0_12 = arith.constant 0 : index
      %c0_13 = arith.constant 0 : index
      %14 = vector.load %arg4[%c0_12, %c0_13] : memref<128x128xbf16, #tpu.memory_space<vmem>>, vector<128x128xbf16>
      %cst_14 = arith.constant dense<0.000000e+00> : vector<128x128xf32>
      %15 = tpu.matmul %13, %14, %cst_14 {dimension_numbers = #tpu.dot_dimension_numbers<[1], [0], [0], [1], [0, 0, 1, 1], [], []>} : vector<128x128xbf16>, vector<128x128xbf16>, vector<128x128xf32> -> vector<128x128xf32>
      %c0_15 = arith.constant 0 : index
      %c0_16 = arith.constant 0 : index
      %16 = vector.load %arg5[%c0_15, %c0_16] : memref<1x128xf32, #tpu.memory_space<vmem>>, vector<1x128xf32>
      %17 = vector.broadcast %16 : vector<1x128xf32> to vector<128x128xf32>
      %18 = arith.addf %15, %17 : vector<128x128xf32>
      %cst_17 = arith.constant 0.000000e+00 : f32
      %19 = vector.broadcast %cst_17 : f32 to vector<128x128xf32>
      %20 = arith.maximumf %18, %19 : vector<128x128xf32>
      %c0_18 = arith.constant 0 : index
      %c0_19 = arith.constant 0 : index
      %21 = vector.load %arg6[%c0_18, %c0_19] : memref<128x128xf32, #tpu.memory_space<vmem>>, vector<128x128xf32>
      tpu.vector_store %arg6[%c0_18, %c0_19], %20 {strides = array<i32>} : memref<128x128xf32, #tpu.memory_space<vmem>>, vector<128x128xf32>,
    } else {
    }
    return
  }
  func.func @transform_0(%arg0: i32, %arg1: i32) -> (i32, i32) {
    %c0_i32 = arith.constant 0 : i32
    return %arg0, %arg1 : i32, i32
  }
  func.func @transform_1(%arg0: i32, %arg1: i32) -> (i32, i32) {
    %c0_i32 = arith.constant 0 : i32
    %c0_i32_0 = arith.constant 0 : i32
    return %arg1, %c0_i32 : i32, i32
  }
  func.func @transform_2(%arg0: i32, %arg1: i32) -> (i32, i32) {
    %c0_i32 = arith.constant 0 : i32
    %c0_i32_0 = arith.constant 0 : i32
    %c0_i32_1 = arith.constant 0 : i32
    return %c0_i32, %c0_i32_0 : i32, i32
  }
  func.func @transform_3(%arg0: i32, %arg1: i32) -> (i32, i32) {
    %c0_i32 = arith.constant 0 : i32
    %c0_i32_0 = arith.constant 0 : i32
    %c0_i32_1 = arith.constant 0 : i32
    return %c0_i32, %c0_i32_0 : i32, i32
  }
  func.func @transform_4(%arg0: i32, %arg1: i32) -> (i32, i32) {
    %c0_i32 = arith.constant 0 : i32
    %c0_i32_0 = arith.constant 0 : i32
    return %arg0, %c0_i32 : i32, i32
  }
}

</mosaic_0001>

<bundles_post_ra>
// kernel: tpu_custom_call.1
= control target key start
LH: loop header
LB: loop body
LE: loop exit
PB: predicated region body
PF: predicated region fallthrough
CT: control target
= control target key end

     0   :  { %9 = vsyncpa [#allocation4], 0  ;;  %s903_s0 = inlined_call_operand.hbm [shape: bf16[128,128], index: 0, kind: input, shape index: {}]   ;;  %s904_s1 = inlined_call_operand.hbm [shape: bf16[128,128], index: 1, kind: input, shape index: {}]   ;;  %s905_s2 = inlined_call_operand.hbm [shape: bf16[128,128], index: 2, kind: input, shape index: {}]   ;;  %s906_s3 = inlined_call_operand.vmem [shape: f32[1,128], index: 3, kind: input, shape index: {}]   ;;  %s907_s4 = inlined_call_operand.hbm [shape: f32[128,128], index: 4, kind: output, shape index: {}]  }
   0x1   :  { %10 = vsyncpa [#allocation7], 0 }
   0x2   :  { %11 = vsyncpa [#allocation5], 0  ;;  %s837_s15 = smov [#allocation6]   ;;  %s838_s17 = smov [#allocation3]  }
   0x3   :  { %s29_s16 = sshll.u32 %s837_s15, 4  ;;  %s17_s18 = sshll.u32 %s838_s17, 4  ;;  %s30_s16 = int_to_ptr.vmem [resolvable:$true] %s29_s16  ;;  %s18_s18 = int_to_ptr.vmem [resolvable:$true] %s17_s18 }
   0x4   :  { %s759_s19 = scalar_lea.vmem %s30_s16, 1024  ;;  %p764_p1 = scmp.lt.s32.totalorder %s30_s16, %s30_s16 }
   0x5   :  { %p760_p0 = scmp.ne.s32.totalorder %s30_s16, %s759_s19  ;;  %p765_p2 = scmp.lt.s32.totalorder %s759_s19, %s759_s19 }
   0x7   :  { %p766_p3 = por %p765_p2, %p764_p1 }
   0x9   :  { %p767_p4 = pnand %p766_p3, %p760_p0 }
   0xb   :  { %770 = shalt.err (!%p767_p4)
}
   0xc   :  { %s839_s20 = smov 64   ;;  %s840_s21 = smov 4  }
   0xd   :  { %35 = dma.hbm_to_vmem [thread:$0]  %s904_s1, 1024, %s30_s16, [#allocation7], %s839_s20, %s839_s20, %s840_s21  }
   0xe   :  { %s779_s24 = scalar_lea.vmem %s18_s18, 1024  ;;  %p784_p6 = scmp.lt.s32.totalorder %s18_s18, %s18_s18 }
   0xf   :  { %p780_p5 = scmp.ne.s32.totalorder %s18_s18, %s779_s24  ;;  %p785_p7 = scmp.lt.s32.totalorder %s779_s24, %s779_s24 }
  0x11   :  { %p786_p8 = por %p785_p7, %p784_p6 }
  0x13   :  { %p787_p9 = pnand %p786_p8, %p780_p5 }
  0x15   :  { %790 = shalt.err (!%p787_p9)
}
  0x16   :  { %23 = dma.hbm_to_vmem [thread:$0]  %s903_s0, 1024, %s18_s18, [#allocation4], %s839_s20, %s839_s20, %s840_s21  }
  0x17   :  { %s841_s27 = smov [#allocation8]  }
  0x18   :  { %s41_s28 = sshll.u32 %s841_s27, 4  ;;  %s42_s28 = int_to_ptr.vmem [resolvable:$true] %s41_s28 }
  0x19   :  { %s799_s29 = scalar_lea.vmem %s42_s28, 1024  ;;  %p804_p11 = scmp.lt.s32.totalorder %s42_s28, %s42_s28 }
  0x1a   :  { %p800_p10 = scmp.ne.s32.totalorder %s42_s28, %s799_s29  ;;  %p805_p12 = scmp.lt.s32.totalorder %s799_s29, %s799_s29 }
  0x1c   :  { %p806_p13 = por %p805_p12, %p804_p11 }
  0x1e   :  { %p807_p0 = pnand %p806_p13, %p800_p10 }
  0x20   :  { %810 = shalt.err (!%p807_p0)
}
  0x21   :  { %47 = dma.hbm_to_vmem [thread:$0]  %s905_s2, 1024, %s42_s28, [#allocation7], %s839_s20, %s839_s20, %s840_s21  }
  0x22   :  { %831 = dma.done.wait [#allocation4], 1024  }
  0x23   :  { %832 = vsyncadd [#allocation4], 4294966272 }
  0x24   :  { %833 = dma.done.wait [#allocation7], 2048  }
  0x25   :  { %834 = vsyncadd [#allocation7], 4294965248  ;;  %v727_v0 = vld [vmem:[#allocation6 + $0x38] sm:$0xff]   ;;  %v728_v1 = vld [vmem:[#allocation6 + $0x30] sm:$0xff]  }
  0x26   :  { %655 = vmatprep.subr.bf16.mxu0 %v727_v0  ;;  %v729_v2 = vld [vmem:[#allocation6 + $0x28] sm:$0xff]   ;;  %v730_v3 = vld [vmem:[#allocation6 + $0x20] sm:$0xff]   ;;  %v731_v5 = vld [vmem:[#allocation6 + $0x18] sm:$0xff]  }
  0x27   :  { %656 = vmatpush3.bf16.msra.mxu0 %v727_v0  ;;  %v735_v4 = vld [vmem:[#allocation3] sm:$0xff]   ;;  %v732_v6 = vld [vmem:[#allocation6 + $0x10] sm:$0xff]   ;;  %v743_v7 = vld [vmem:[#allocation8 + $0x38] sm:$0xff]  }
  0x28   :  { %657 = vmatprep.subr.bf16.mxu0 %v728_v1  ;;  %671 = vmatprep.mubr.bf16.mxu0 %v735_v4  ;;  %v744_v8 = vld [vmem:[#allocation8 + $0x30] sm:$0xff]   ;;  %v733_v9 = vld [vmem:[#allocation6 + $0x8] sm:$0xff]   ;;  %v734_v11 = vld [vmem:[#allocation6] sm:$0xff]  }
  0x29   :  { %687 = vmatprep.subr.bf16.mxu1 %v743_v7  ;;  %v745_v10 = vld [vmem:[#allocation8 + $0x28] sm:$0xff]   ;;  %v746_v12 = vld [vmem:[#allocation8 + $0x20] sm:$0xff]   ;;  %v747_v13 = vld [vmem:[#allocation8 + $0x18] sm:$0xff]  }
  0x2a   :  { %688 = vmatpush3.bf16.msra.mxu1 %v743_v7  ;;  %v736_v14 = vld [vmem:[#allocation3 + $0x8] sm:$0xff]   ;;  %v737_v15 = vld [vmem:[#allocation3 + $0x10] sm:$0xff]   ;;  %v738_v17 = vld [vmem:[#allocation3 + $0x18] sm:$0xff]  }
  0x2b   :  { %658 = vmatpush3.bf16.msra.mxu0 %v728_v1  ;;  %689 = vmatprep.subr.bf16.mxu1 %v744_v8  ;;  %v748_v16 = vld [vmem:[#allocation8 + $0x10] sm:$0xff]   ;;  %v739_v18 = vld [vmem:[#allocation3 + $0x20] sm:$0xff]   ;;  %v740_v19 = vld [vmem:[#allocation3 + $0x28] sm:$0xff]  }
  0x2c   :  { %659 = vmatprep.subr.bf16.mxu0 %v729_v2  ;;  %v741_v20 = vld [vmem:[#allocation3 + $0x30] sm:$0xff]   ;;  %v742_v21 = vld [vmem:[#allocation3 + $0x38] sm:$0xff]   ;;  %v749_v22 = vld [vmem:[#allocation8 + $0x8] sm:$0xff]  }
  0x2d   :  { %v750_v23 = vld [vmem:[#allocation8] sm:$0xff]  }
  0x2e   :  { %690 = vmatpush3.bf16.msra.mxu1 %v744_v8  ;;  %v882_v48 = vld [vmem:[%s906_s3] ss:$0 sm:$0xff]  ;;  %s842_s3 = smov [#allocation9]  }
  0x2f   :  { %660 = vmatpush3.bf16.msra.mxu0 %v729_v2  ;;  %691 = vmatprep.subr.bf16.mxu1 %v745_v10  ;;  %s585_s5 = sshll.u32 %s842_s3, 4  ;;  %s586_s5 = int_to_ptr.vmem [resolvable:$true] %s585_s5 }
  0x30   :  { %661 = vmatprep.subr.bf16.mxu0 %v730_v3  ;;  %s811_s6 = scalar_lea.vmem %s586_s5, 2048  ;;  %p816_p2 = scmp.lt.s32.totalorder %s586_s5, %s586_s5 }
  0x31   :  { %p812_p1 = scmp.ne.s32.totalorder %s586_s5, %s811_s6  ;;  %p817_p3 = scmp.lt.s32.totalorder %s811_s6, %s811_s6 }
  0x32   :  { %692 = vmatpush3.bf16.msra.mxu1 %v745_v10 }
  0x33   :  { %662 = vmatpush3.bf16.msra.mxu0 %v730_v3  ;;  %693 = vmatprep.subr.bf16.mxu1 %v746_v12  ;;  %p818_p4 = por %p817_p3, %p816_p2 }
  0x34   :  { %663 = vmatprep.subr.bf16.mxu0 %v731_v5 }
  0x35   :  { %p819_p5 = pnand %p818_p4, %p812_p1 }
  0x36   :  { %694 = vmatpush3.bf16.msra.mxu1 %v746_v12 }
  0x37   :  { %664 = vmatpush3.bf16.msra.mxu0 %v731_v5  ;;  %695 = vmatprep.subr.bf16.mxu1 %v747_v13 }
  0x38   :  { %665 = vmatprep.subr.bf16.mxu0 %v732_v6 }
  0x3a   :  { %696 = vmatpush3.bf16.msra.mxu1 %v747_v13 }
  0x3b   :  { %666 = vmatpush3.bf16.msra.mxu0 %v732_v6  ;;  %697 = vmatprep.subr.bf16.mxu1 %v748_v16 }
  0x3c   :  { %667 = vmatprep.subr.bf16.mxu0 %v733_v9 }
  0x3e   :  { %698 = vmatpush3.bf16.msra.mxu1 %v748_v16 }
  0x3f   :  { %668 = vmatpush3.bf16.msra.mxu0 %v733_v9  ;;  %699 = vmatprep.subr.bf16.mxu1 %v749_v22 }
  0x40   :  { %669 = vmatprep.subr.bf16.mxu0 %v734_v11 }
  0x42   :  { %700 = vmatpush3.bf16.msra.mxu1 %v749_v22 }
  0x43   :  { %670 = vmatpush3.bf16.msra.mxu0 %v734_v11  ;;  %701 = vmatprep.subr.bf16.mxu1 %v750_v23 }
  0x46   :  { %672 = vmatmul.mubr.bf16.vlgmr.msra.gmra.mxu0 %v736_v14  ;;  %702 = vmatpush3.bf16.msra.mxu1 %v750_v23 }
  0x47   :  { %675 = vmatprep.mubr.bf16.mxu0 %v737_v15 }
  0x4e   :  { %676 = vmatmul.mubr.bf16.gmra.mxu0 %v738_v17 }
  0x4f   :  { %679 = vmatprep.mubr.bf16.mxu0 %v739_v18 }
  0x56   :  { %680 = vmatmul.mubr.bf16.gmra.mxu0 %v740_v19 }
  0x57   :  { %683 = vmatprep.mubr.bf16.mxu0 %v741_v20 }
  0x5e   :  { %684 = vmatmul.mubr.bf16.gmra.mxu0 %v742_v21 }
 0x106   :  { %v673_v24 = vpop.f32.mrf.mxu0 }
 0x108   :  { %v258_v25 = vpop.f32.mrf.mxu0 }
 0x10a   :  { %v674_v26 = vpop.f32.mrf.mxu0 }
 0x10b   :  { %v373_v29 = vpack.c.bf16 %v674_v26, %v673_v24 }
 0x10c   :  { %v261_v27 = vpop.f32.mrf.mxu0 }
 0x10d   :  { %v372_v28 = vpack.c.bf16 %v261_v27, %v258_v25 }
 0x10e   :  { %v677_v30 = vpop.f32.mrf.mxu0 }
 0x10f   :  { %703 = vmatprep.mubr.bf16.mxu1 %v372_v28 }
 0x110   :  { %v274_v31 = vpop.f32.mrf.mxu0  ;;  %704 = vmatmul.mubr.bf16.vlgmr.msra.gmra.mxu1 %v373_v29 }
 0x112   :  { %v678_v32 = vpop.f32.mrf.mxu0 }
 0x113   :  { %v375_v35 = vpack.c.bf16 %v678_v32, %v677_v30 }
 0x114   :  { %v277_v33 = vpop.f32.mrf.mxu0 }
 0x115   :  { %v374_v34 = vpack.c.bf16 %v277_v33, %v274_v31 }
 0x116   :  { %v681_v36 = vpop.f32.mrf.mxu0 }
 0x117   :  { %707 = vmatprep.mubr.bf16.mxu1 %v374_v34 }
 0x118   :  { %v290_v37 = vpop.f32.mrf.mxu0  ;;  %708 = vmatmul.mubr.bf16.gmra.mxu1 %v375_v35 }
 0x11a   :  { %v682_v38 = vpop.f32.mrf.mxu0 }
 0x11b   :  { %v377_v41 = vpack.c.bf16 %v682_v38, %v681_v36 }
 0x11c   :  { %v293_v39 = vpop.f32.mrf.mxu0 }
 0x11d   :  { %v376_v40 = vpack.c.bf16 %v293_v39, %v290_v37 }
 0x11e   :  { %v685_v42 = vpop.f32.mrf.mxu0 }
 0x11f   :  { %711 = vmatprep.mubr.bf16.mxu1 %v376_v40 }
 0x120   :  { %v306_v43 = vpop.f32.mrf.mxu0  ;;  %712 = vmatmul.mubr.bf16.gmra.mxu1 %v377_v41 }
 0x122   :  { %v686_v44 = vpop.f32.mrf.mxu0 }
 0x123   :  { %v379_v47 = vpack.c.bf16 %v686_v44, %v685_v42 }
 0x124   :  { %v309_v45 = vpop.f32.mrf.mxu0 }
 0x125   :  { %v378_v46 = vpack.c.bf16 %v309_v45, %v306_v43 }
 0x127   :  { %715 = vmatprep.mubr.bf16.mxu1 %v378_v46 }
 0x128   :  { %716 = vmatmul.mubr.bf16.gmra.mxu1 %v379_v47 }
 0x1d0   :  { %v705_v49 = vpop.f32.mrf.mxu1 }
 0x1d1   :  { %v494_v50 = vadd.f32 %v705_v49, %v882_v48 }
 0x1d2   :  { %v485_v51 = vpop.f32.mrf.mxu1 }
 0x1d3   :  { %v550_v52 = vmax.f32 %v494_v50, 0.0  ;;  %v486_v53 = vadd.f32 %v882_v48, %v485_v51 }
 0x1d4   :  { %v706_v54 = vpop.f32.mrf.mxu1 }
 0x1d5   :  { %566 = vst [vmem:[#allocation9 + $0x10] sm:$0xff] %v550_v52  ;;  %v548_v55 = vmax.f32 %v486_v53, 0.0  ;;  %v497_v56 = vadd.f32 %v706_v54, %v882_v48 }
 0x1d6   :  { %v488_v57 = vpop.f32.mrf.mxu1 }
 0x1d7   :  { %564 = vst [vmem:[#allocation9] sm:$0xff] %v548_v55  ;;  %v551_v58 = vmax.f32 %v497_v56, 0.0  ;;  %v489_v59 = vadd.f32 %v882_v48, %v488_v57 }
 0x1d8   :  { %v709_v60 = vpop.f32.mrf.mxu1 }
 0x1d9   :  { %567 = vst [vmem:[#allocation9 + $0x18] sm:$0xff] %v551_v58  ;;  %v549_v61 = vmax.f32 %v489_v59, 0.0  ;;  %v510_v62 = vadd.f32 %v709_v60, %v882_v48 }
 0x1da   :  { %v501_v63 = vpop.f32.mrf.mxu1 }
 0x1db   :  { %565 = vst [vmem:[#allocation9 + $0x8] sm:$0xff] %v549_v61  ;;  %v554_v0 = vmax.f32 %v510_v62, 0.0  ;;  %v502_v1 = vadd.f32 %v882_v48, %v501_v63 }
 0x1dc   :  { %v710_v2 = vpop.f32.mrf.mxu1 }
 0x1dd   :  { %570 = vst [vmem:[#allocation9 + $0x30] sm:$0xff] %v554_v0  ;;  %v552_v3 = vmax.f32 %v502_v1, 0.0  ;;  %v513_v4 = vadd.f32 %v710_v2, %v882_v48 }
 0x1de   :  { %v504_v5 = vpop.f32.mrf.mxu1 }
 0x1df   :  { %568 = vst [vmem:[#allocation9 + $0x20] sm:$0xff] %v552_v3  ;;  %v555_v6 = vmax.f32 %v513_v4, 0.0  ;;  %v505_v7 = vadd.f32 %v882_v48, %v504_v5 }
 0x1e0   :  { %v713_v8 = vpop.f32.mrf.mxu1 }
 0x1e1   :  { %571 = vst [vmem:[#allocation9 + $0x38] sm:$0xff] %v555_v6  ;;  %v553_v9 = vmax.f32 %v505_v7, 0.0  ;;  %v526_v10 = vadd.f32 %v713_v8, %v882_v48 }
 0x1e2   :  { %v517_v11 = vpop.f32.mrf.mxu1 }
 0x1e3   :  { %569 = vst [vmem:[#allocation9 + $0x28] sm:$0xff] %v553_v9  ;;  %v558_v12 = vmax.f32 %v526_v10, 0.0  ;;  %v518_v13 = vadd.f32 %v882_v48, %v517_v11 }
 0x1e4   :  { %v714_v14 = vpop.f32.mrf.mxu1 }
 0x1e5   :  { %574 = vst [vmem:[#allocation9 + $0x50] sm:$0xff] %v558_v12  ;;  %v556_v15 = vmax.f32 %v518_v13, 0.0  ;;  %v529_v16 = vadd.f32 %v714_v14, %v882_v48 }
 0x1e6   :  { %v520_v17 = vpop.f32.mrf.mxu1 }
 0x1e7   :  { %572 = vst [vmem:[#allocation9 + $0x40] sm:$0xff] %v556_v15  ;;  %v559_v18 = vmax.f32 %v529_v16, 0.0  ;;  %v521_v19 = vadd.f32 %v882_v48, %v520_v17 }
 0x1e8   :  { %v717_v20 = vpop.f32.mrf.mxu1 }
 0x1e9   :  { %575 = vst [vmem:[#allocation9 + $0x58] sm:$0xff] %v559_v18  ;;  %v557_v21 = vmax.f32 %v521_v19, 0.0  ;;  %v542_v22 = vadd.f32 %v717_v20, %v882_v48 }
 0x1ea   :  { %v533_v23 = vpop.f32.mrf.mxu1 }
 0x1eb   :  { %573 = vst [vmem:[#allocation9 + $0x48] sm:$0xff] %v557_v21  ;;  %v562_v24 = vmax.f32 %v542_v22, 0.0  ;;  %v534_v25 = vadd.f32 %v882_v48, %v533_v23 }
 0x1ec   :  { %v718_v26 = vpop.f32.mrf.mxu1 }
 0x1ed   :  { %578 = vst [vmem:[#allocation9 + $0x70] sm:$0xff] %v562_v24  ;;  %v560_v27 = vmax.f32 %v534_v25, 0.0  ;;  %v545_v28 = vadd.f32 %v718_v26, %v882_v48 }
 0x1ee   :  { %v536_v29 = vpop.f32.mrf.mxu1 }
 0x1ef   :  { %576 = vst [vmem:[#allocation9 + $0x60] sm:$0xff] %v560_v27  ;;  %v563_v30 = vmax.f32 %v545_v28, 0.0  ;;  %v537_v31 = vadd.f32 %v882_v48, %v536_v29 }
 0x1f1   :  { %579 = vst [vmem:[#allocation9 + $0x78] sm:$0xff] %v563_v30  ;;  %v561_v32 = vmax.f32 %v537_v31, 0.0 }
 0x1f3   :  { %577 = vst [vmem:[#allocation9 + $0x68] sm:$0xff] %v561_v32 }
 0x1f4   :  { %822 = shalt.err (!%p819_p5)
}
 0x1f5   :  { %s843_s7 = smov 128   ;;  %s844_s8 = smov 8  }
 0x1f6   :  { %591 = dma.vmem_to_hbm [thread:$0]  %s586_s5, 2048, %s907_s4, [#allocation5], %s843_s7, %s843_s7, %s844_s8  }
 0x1f7   :  { %835 = dma.done.wait [#allocation5], 2048  }
 0x1f8   :  { %836 = vsyncadd [#allocation5], 4294965248 }
 0x1f9   :  { %595 = vsyncpa [#allocation4], 1 }
 0x1fa   :  { %596 = vsyncpa [#allocation7], 1 }
 0x1fb   :  { %597 = vsyncpa [#allocation5], 1 }

</bundles_post_ra>
